<compile_context>
chip_gen: v7x
topology: tpu7x:2x2x1
jax: 0.10.0
libtpu: 0.0.40
codegen_flags: <defaults>
</compile_context>

<pallas_src>
import functools

import jax
import jax.numpy as jnp
from jax.experimental import pallas as pl
from jax.experimental.pallas import tpu as pltpu


def _stga_kernel(x_ref, a1_ref, a2_ref, bt_ref, rc_ref, e_ref, wsT_ref,
                 out_ref, *, inv_hw):
    # x_ref / out_ref : (R, HWp)      R = nb*T*C rows packed on the sublane axis
    # a1_ref, a2_ref  : (R, R)  f32   kron(I_{nb*T}, w1) / kron(I_{nb*T}, w2) (1x1 convs)
    # bt_ref          : (R, R)  f32   kron(I_nb, kron(wt, I_C))   (TEM temporal FC)
    # rc_ref          : (nb*T, R) f32 channel-mean matrix (entries 1/C)
    # e_ref           : (R, nb*T) f32 repeat matrix (broadcast t-gate over channels)
    # wsT_ref         : (HWp, HWp) f32 SGEM spatial FC, contraction-major (ws^T)
    xf = x_ref[...].astype(jnp.float32)          # no-op for f32 storage

    a1 = a1_ref[...]
    a2 = a2_ref[...]
    bt = bt_ref[...]
    rc = rc_ref[...]
    e = e_ref[...]
    wsT = wsT_ref[...]

    # conv2d_1 (1x1, bias=False): one (R,R)@(R,HWp) MXU matmul for nb batch elems.
    xc1 = jnp.dot(a1, xf, preferred_element_type=jnp.float32)        # (R, HWp)

    # TEM: spatial GAP (lane reduce) -> temporal FC (kron-folded) -> sigmoid.
    m_t = jnp.sum(xc1, axis=-1, keepdims=True) * inv_hw              # (R, 1)
    gate_t = jax.nn.sigmoid(
        jnp.dot(bt, m_t, preferred_element_type=jnp.float32))        # (R, 1)

    # SGEM: channel mean -> spatial FC -> sigmoid -> broadcast back over channels.
    m_s = jnp.dot(rc, xc1, preferred_element_type=jnp.float32)       # (nb*T, HWp)
    g_s = jax.nn.sigmoid(
        jnp.dot(m_s, wsT, preferred_element_type=jnp.float32))       # (nb*T, HWp)
    gate_s = jnp.dot(e, g_s, preferred_element_type=jnp.float32)     # (R, HWp)

    # Fused gating: x_TEM + x_SGEM == xc1 * (gate_t + gate_s).
    x_mid = xc1 * (gate_t + gate_s)

    # conv2d_2 (1x1, bias=False) + residual with the original input.
    y = jnp.dot(a2, x_mid, preferred_element_type=jnp.float32)
    out_ref[...] = (y + xf).astype(out_ref.dtype)


def stga_forward(x, w1, w2, wt, ws, *, max_rows_per_block=256):
    """x: (N, T, C, H, W) (per-frame NCHW, PyTorch convention)."""
    n, t, c, h, w = x.shape
    hw = h * w
    hwp = pl.cdiv(hw, 128) * 128          # keep lanes dense / stores unmasked
    p = t * c

    xr = x.reshape(n * p, hw)             # free reshape: rows = (n, t, c)
    if hwp != hw:
        xr = jnp.pad(xr, ((0, 0), (0, hwp - hw)))
        ws_pad = jnp.pad(ws.astype(jnp.float32),
                         ((0, hwp - hw), (0, hwp - hw)))
    else:
        ws_pad = ws.astype(jnp.float32)

    # Batch elements per grid step: pack rows up to ~one MXU tile while dividing N.
    nb = max(1, min(n, max_rows_per_block // max(p, 1)))
    while n % nb != 0:
        nb -= 1
    r = nb * p
    assert r % 8 == 0 or n // nb == 1, "row block must be sublane-aligned"

    f32 = jnp.float32
    eye_c = jnp.eye(c, dtype=f32)
    eye_nb = jnp.eye(nb, dtype=f32)
    eye_nbt = jnp.eye(nb * t, dtype=f32)
    a1 = jnp.kron(eye_nbt, w1.astype(f32))                   # (R, R)  conv2d_1
    a2 = jnp.kron(eye_nbt, w2.astype(f32))                   # (R, R)  conv2d_2
    bt = jnp.kron(eye_nb, jnp.kron(wt.astype(f32), eye_c))   # (R, R)  temporal FC
    e = jnp.kron(eye_nbt, jnp.ones((c, 1), dtype=f32))       # (R, nb*T) gate_s repeat
    rc = e.T / c                                             # (nb*T, R) channel mean
    wsT = ws_pad.T                                           # (HWp, HWp) ws^T

    kernel = functools.partial(_stga_kernel, inv_hw=1.0 / float(hw))
    out = pl.pallas_call(
        kernel,
        out_shape=jax.ShapeDtypeStruct((n * p, hwp), x.dtype),
        grid_spec=pltpu.PrefetchScalarGridSpec(
            num_scalar_prefetch=0,
            grid=(n // nb,),
            in_specs=[
                pl.BlockSpec((r, hwp), lambda i: (i, 0)),          # x rows
                pl.BlockSpec((r, r), lambda i: (0, 0)),            # a1
                pl.BlockSpec((r, r), lambda i: (0, 0)),            # a2
                pl.BlockSpec((r, r), lambda i: (0, 0)),            # bt
                pl.BlockSpec((nb * t, r), lambda i: (0, 0)),       # rc
                pl.BlockSpec((r, nb * t), lambda i: (0, 0)),       # e
                pl.BlockSpec((hwp, hwp), lambda i: (0, 0)),        # wsT
            ],
            out_specs=pl.BlockSpec((r, hwp), lambda i: (i, 0)),
        ),
        compiler_params=pltpu.CompilerParams(
            dimension_semantics=("parallel",)),
    )(xr, a1, a2, bt, rc, e, wsT)

    if hwp != hw:
        out = out[:, :hw]
    return out.reshape(n, t, c, h, w)


def stga_reference(x, w1, w2, wt, ws):
    """Pure-JAX reference replicating the module semantics (f32)."""
    n, t, c, h, w = x.shape
    xr = x.reshape(n, t, c, h * w).astype(jnp.float32)
    xc1 = jnp.einsum('oc,ntch->ntoh', w1, xr)
    m_t = xc1.mean(axis=-1)                                   # (n, t, c)
    gate_t = jax.nn.sigmoid(jnp.einsum('st,ntc->nsc', wt, m_t))
    x_tem = xc1 * gate_t[..., None]
    m_s = xc1.mean(axis=2)                                    # (n, t, hw)
    gate_s = jax.nn.sigmoid(jnp.einsum('ph,nth->ntp', ws, m_s))
    x_sgem = xc1 * gate_s[:, :, None, :]
    y = jnp.einsum('oc,ntch->ntoh', w2, x_tem + x_sgem)
    return (y + xr).reshape(n, t, c, h, w)


if __name__ == "__main__":
    # Small shapes consistent with the module: x (n, t, c, h, w)
    N, T, C, H, W = 2, 8, 4, 16, 16
    key = jax.random.PRNGKey(0)
    kx, k1, k2, kt, ks = jax.random.split(key, 5)

    x = jax.random.normal(kx, (N, T, C, H, W), dtype=jnp.float32)
    # Deterministic parameter init (synthetic, no checkpoint).
    w1 = jax.random.normal(k1, (C, C), dtype=jnp.float32) * (1.0 / jnp.sqrt(C))
    w2 = jax.random.normal(k2, (C, C), dtype=jnp.float32) * (1.0 / jnp.sqrt(C))
    wt = jax.random.normal(kt, (T, T), dtype=jnp.float32) * (1.0 / jnp.sqrt(T))
    ws = jax.random.normal(ks, (H * W, H * W), dtype=jnp.float32) * (1.0 / jnp.sqrt(H * W))

    out = jax.block_until_ready(stga_forward(x, w1, w2, wt, ws))
    ref = jax.block_until_ready(stga_reference(x, w1, w2, wt, ws))

    assert out.shape == (N, T, C, H, W)
    assert bool(jnp.all(jnp.isfinite(out)))
    assert bool(jnp.allclose(out, ref, atol=2e-2, rtol=2e-2))

    print("KERNEL_OK")
</pallas_src>

<mosaic_0001>
module attributes {stable_mosaic.version = 11 : i64} {
  func.func @_stga_kernel(%arg0: i32, %arg1: memref<64x256xf32, #tpu.memory_space<vmem>>, %arg2: memref<64x64xf32, #tpu.memory_space<vmem>>, %arg3: memref<64x64xf32, #tpu.memory_space<vmem>>, %arg4: memref<64x64xf32, #tpu.memory_space<vmem>>, %arg5: memref<16x64xf32, #tpu.memory_space<vmem>>, %arg6: memref<64x16xf32, #tpu.memory_space<vmem>>, %arg7: memref<256x256xf32, #tpu.memory_space<vmem>>, %arg8: memref<64x256xf32, #tpu.memory_space<vmem>>) attributes {dimension_semantics = [#tpu.dimension_semantics<parallel>], iteration_bounds = array<i64: 1>, scalar_prefetch = 0 : i64, scratch_operands = 0 : i64, tpu.core_type = #tpu.core_type<tc>, window_params = [{transform_indices = @transform_0, window_bounds = array<i64: 64, 256>}, {pipeline_mode = #tpu.pipeline_mode<synchronous>, transform_indices = @transform_1, window_bounds = array<i64: 64, 64>}, {pipeline_mode = #tpu.pipeline_mode<synchronous>, transform_indices = @transform_2, window_bounds = array<i64: 64, 64>}, {pipeline_mode = #tpu.pipeline_mode<synchronous>, transform_indices = @transform_3, window_bounds = array<i64: 64, 64>}, {pipeline_mode = #tpu.pipeline_mode<synchronous>, transform_indices = @transform_4, window_bounds = array<i64: 16, 64>}, {pipeline_mode = #tpu.pipeline_mode<synchronous>, transform_indices = @transform_5, window_bounds = array<i64: 64, 16>}, {pipeline_mode = #tpu.pipeline_mode<synchronous>, transform_indices = @transform_6, window_bounds = array<i64: 256, 256>}, {transform_indices = @transform_7, window_bounds = array<i64: 64, 256>}]} {
    %c0 = arith.constant 0 : index
    %c0_0 = arith.constant 0 : index
    %0 = vector.load %arg1[%c0, %c0_0] : memref<64x256xf32, #tpu.memory_space<vmem>>, vector<64x256xf32>
    %c0_1 = arith.constant 0 : index
    %c0_2 = arith.constant 0 : index
    %1 = vector.load %arg2[%c0_1, %c0_2] : memref<64x64xf32, #tpu.memory_space<vmem>>, vector<64x64xf32>
    %c0_3 = arith.constant 0 : index
    %c0_4 = arith.constant 0 : index
    %2 = vector.load %arg3[%c0_3, %c0_4] : memref<64x64xf32, #tpu.memory_space<vmem>>, vector<64x64xf32>
    %c0_5 = arith.constant 0 : index
    %c0_6 = arith.constant 0 : index
    %3 = vector.load %arg4[%c0_5, %c0_6] : memref<64x64xf32, #tpu.memory_space<vmem>>, vector<64x64xf32>
    %c0_7 = arith.constant 0 : index
    %c0_8 = arith.constant 0 : index
    %4 = vector.load %arg5[%c0_7, %c0_8] : memref<16x64xf32, #tpu.memory_space<vmem>>, vector<16x64xf32>
    %c0_9 = arith.constant 0 : index
    %c0_10 = arith.constant 0 : index
    %5 = vector.load %arg6[%c0_9, %c0_10] : memref<64x16xf32, #tpu.memory_space<vmem>>, vector<64x16xf32>
    %c0_11 = arith.constant 0 : index
    %c0_12 = arith.constant 0 : index
    %6 = vector.load %arg7[%c0_11, %c0_12] : memref<256x256xf32, #tpu.memory_space<vmem>>, vector<256x256xf32>
    %cst = arith.constant dense<0.000000e+00> : vector<64x256xf32>
    %7 = tpu.matmul %1, %0, %cst {dimension_numbers = #tpu.dot_dimension_numbers<[1], [0], [0], [1], [0, 0, 1, 1], [], []>} : vector<64x64xf32>, vector<64x256xf32>, vector<64x256xf32> -> vector<64x256xf32>
    %cst_13 = arith.constant dense<0.000000e+00> : vector<64xf32>
    %8 = vector.multi_reduction <add>, %7, %cst_13 [1] : vector<64x256xf32> to vector<64xf32>
    %9 = vector.shape_cast %8 : vector<64xf32> to vector<64x1xf32>
    %cst_14 = arith.constant 3.906250e-03 : f32
    %10 = vector.broadcast %cst_14 : f32 to vector<64x1xf32>
    %11 = arith.mulf %9, %10 : vector<64x1xf32>
    %cst_15 = arith.constant dense<0.000000e+00> : vector<64x1xf32>
    %12 = tpu.matmul %3, %11, %cst_15 {dimension_numbers = #tpu.dot_dimension_numbers<[1], [0], [0], [1], [0, 0, 1, 1], [], []>} : vector<64x64xf32>, vector<64x1xf32>, vector<64x1xf32> -> vector<64x1xf32>
    %13 = arith.negf %12 : vector<64x1xf32>
    %14 = math.exp %13 : vector<64x1xf32>
    %cst_16 = arith.constant 1.000000e+00 : f32
    %15 = vector.broadcast %cst_16 : f32 to vector<64x1xf32>
    %16 = arith.addf %15, %14 : vector<64x1xf32>
    %17 = arith.divf %15, %16 : vector<64x1xf32>
    %cst_17 = arith.constant dense<0.000000e+00> : vector<16x256xf32>
    %18 = tpu.matmul %4, %7, %cst_17 {dimension_numbers = #tpu.dot_dimension_numbers<[1], [0], [0], [1], [0, 0, 1, 1], [], []>} : vector<16x64xf32>, vector<64x256xf32>, vector<16x256xf32> -> vector<16x256xf32>
    %cst_18 = arith.constant dense<0.000000e+00> : vector<16x256xf32>
    %19 = tpu.matmul %18, %6, %cst_18 {dimension_numbers = #tpu.dot_dimension_numbers<[1], [0], [0], [1], [0, 0, 1, 1], [], []>} : vector<16x256xf32>, vector<256x256xf32>, vector<16x256xf32> -> vector<16x256xf32>
    %20 = arith.negf %19 : vector<16x256xf32>
    %21 = math.exp %20 : vector<16x256xf32>
    %cst_19 = arith.constant 1.000000e+00 : f32
    %22 = vector.broadcast %cst_19 : f32 to vector<16x256xf32>
    %23 = arith.addf %22, %21 : vector<16x256xf32>
    %24 = arith.divf %22, %23 : vector<16x256xf32>
    %cst_20 = arith.constant dense<0.000000e+00> : vector<64x256xf32>
    %25 = tpu.matmul %5, %24, %cst_20 {dimension_numbers = #tpu.dot_dimension_numbers<[1], [0], [0], [1], [0, 0, 1, 1], [], []>} : vector<64x16xf32>, vector<16x256xf32>, vector<64x256xf32> -> vector<64x256xf32>
    %26 = vector.broadcast %17 : vector<64x1xf32> to vector<64x256xf32>
    %27 = arith.addf %26, %25 : vector<64x256xf32>
    %28 = arith.mulf %7, %27 : vector<64x256xf32>
    %cst_21 = arith.constant dense<0.000000e+00> : vector<64x256xf32>
    %29 = tpu.matmul %2, %28, %cst_21 {dimension_numbers = #tpu.dot_dimension_numbers<[1], [0], [0], [1], [0, 0, 1, 1], [], []>} : vector<64x64xf32>, vector<64x256xf32>, vector<64x256xf32> -> vector<64x256xf32>
    %30 = arith.addf %29, %0 : vector<64x256xf32>
    %c0_22 = arith.constant 0 : index
    %c0_23 = arith.constant 0 : index
    %31 = vector.load %arg8[%c0_22, %c0_23] : memref<64x256xf32, #tpu.memory_space<vmem>>, vector<64x256xf32>
    tpu.vector_store %arg8[%c0_22, %c0_23], %30 {strides = array<i32>} : memref<64x256xf32, #tpu.memory_space<vmem>>, vector<64x256xf32>,
    return
  }
  func.func @transform_0(%arg0: i32) -> (i32, i32) {
    %c0_i32 = arith.constant 0 : i32
    %c0_i32_0 = arith.constant 0 : i32
    return %arg0, %c0_i32 : i32, i32
  }
  func.func @transform_1(%arg0: i32) -> (i32, i32) {
    %c0_i32 = arith.constant 0 : i32
    %c0_i32_0 = arith.constant 0 : i32
    %c0_i32_1 = arith.constant 0 : i32
    return %c0_i32, %c0_i32_0 : i32, i32
  }
  func.func @transform_2(%arg0: i32) -> (i32, i32) {
    %c0_i32 = arith.constant 0 : i32
    %c0_i32_0 = arith.constant 0 : i32
    %c0_i32_1 = arith.constant 0 : i32
    return %c0_i32, %c0_i32_0 : i32, i32
  }
  func.func @transform_3(%arg0: i32) -> (i32, i32) {
    %c0_i32 = arith.constant 0 : i32
    %c0_i32_0 = arith.constant 0 : i32
    %c0_i32_1 = arith.constant 0 : i32
    return %c0_i32, %c0_i32_0 : i32, i32
  }
  func.func @transform_4(%arg0: i32) -> (i32, i32) {
    %c0_i32 = arith.constant 0 : i32
    %c0_i32_0 = arith.constant 0 : i32
    %c0_i32_1 = arith.constant 0 : i32
    return %c0_i32, %c0_i32_0 : i32, i32
  }
  func.func @transform_5(%arg0: i32) -> (i32, i32) {
    %c0_i32 = arith.constant 0 : i32
    %c0_i32_0 = arith.constant 0 : i32
    %c0_i32_1 = arith.constant 0 : i32
    return %c0_i32, %c0_i32_0 : i32, i32
  }
  func.func @transform_6(%arg0: i32) -> (i32, i32) {
    %c0_i32 = arith.constant 0 : i32
    %c0_i32_0 = arith.constant 0 : i32
    %c0_i32_1 = arith.constant 0 : i32
    return %c0_i32, %c0_i32_0 : i32, i32
  }
  func.func @transform_7(%arg0: i32) -> (i32, i32) {
    %c0_i32 = arith.constant 0 : i32
    %c0_i32_0 = arith.constant 0 : i32
    return %arg0, %c0_i32 : i32, i32
  }
}

</mosaic_0001>

<bundles_post_ra>
// kernel: tpu_custom_call.1
= control target key start
LH: loop header
LB: loop body
LE: loop exit
PB: predicated region body
PF: predicated region fallthrough
CT: control target
= control target key end

     0   :  { %12 = vsyncpa [#allocation3], 0  ;;  %s1882_s0 = inlined_call_operand.hbm [shape: f32[64,256], index: 0, kind: input, shape index: {}]   ;;  %s1883_s1 = inlined_call_operand.vmem [shape: f32[64,64], index: 1, kind: input, shape index: {}]   ;;  %s1884_s2 = inlined_call_operand.hbm [shape: f32[64,64], index: 2, kind: input, shape index: {}]   ;;  %s1885_s3 = inlined_call_operand.hbm [shape: f32[64,64], index: 3, kind: input, shape index: {}]   ;;  %s1886_s4 = inlined_call_operand.vmem [shape: f32[16,64], index: 4, kind: input, shape index: {}]   ;;  %s1887_s5 = inlined_call_operand.vmem [shape: f32[64,16], index: 5, kind: input, shape index: {}]   ;;  %s1888_s6 = inlined_call_operand.hbm [shape: f32[256,256], index: 6, kind: input, shape index: {}]   ;;  %s1889_s7 = inlined_call_operand.hbm [shape: f32[64,256], index: 7, kind: output, shape index: {}]  }
   0x1   :  { %13 = vsyncpa [#allocation6], 0 }
   0x2   :  { %14 = vsyncpa [#allocation9], 0 }
   0x3   :  { %15 = vsyncpa [#allocation4], 0  ;;  %s1527_s24 = smov [#allocation5]   ;;  %s1409_s28 = scalar_lea.hbm %s1884_s2, 1024 }
   0x4   :  { %s35_s25 = sshll.u32 %s1527_s24, 4  ;;  %p1410_p0 = scmp.ne.s32.totalorder %s1884_s2, %s1409_s28  ;;  %s36_s25 = int_to_ptr.vmem [resolvable:$true] %s35_s25 }
   0x5   :  { %p1413_p1 = scmp.lt.u32.totalorder %s1409_s28, %s1884_s2 }
   0x7   :  { %p1415_p2 = pnand %p1413_p1, %p1410_p0 }
   0x9   :  { %1418 = shalt.err (!%p1415_p2)
}
   0xa   :  { %s1419_s10 = scalar_lea.vmem %s36_s25, 1024  ;;  %p1424_p4 = scmp.lt.s32.totalorder %s36_s25, %s36_s25 }
   0xb   :  { %p1420_p3 = scmp.ne.s32.totalorder %s36_s25, %s1419_s10  ;;  %p1425_p5 = scmp.lt.s32.totalorder %s1419_s10, %s1419_s10 }
   0xd   :  { %p1426_p6 = por %p1425_p5, %p1424_p4 }
   0xf   :  { %p1427_p7 = pnand %p1426_p6, %p1420_p3 }
  0x11   :  { %1430 = shalt.err (!%p1427_p7)
}
  0x12   :  { %s1528_s11 = smov 128   ;;  %s1529_s12 = smov 8  }
  0x13   :  { %41 = dma.hbm_to_vmem [thread:$0]  %s1884_s2, 1024, %s36_s25, [#allocation6], %s1528_s11, %s1528_s11, %s1529_s12  }
  0x14   :  { %s1530_s15 = smov [#allocation2]   ;;  %s1431_s19 = scalar_lea.hbm %s1882_s0, 2048 }
  0x15   :  { %s21_s16 = sshll.u32 %s1530_s15, 4  ;;  %p1432_p8 = scmp.ne.s32.totalorder %s1882_s0, %s1431_s19  ;;  %s22_s16 = int_to_ptr.vmem [resolvable:$true] %s21_s16 }
  0x16   :  { %p1435_p9 = scmp.lt.u32.totalorder %s1431_s19, %s1882_s0 }
  0x18   :  { %p1437_p10 = pnand %p1435_p9, %p1432_p8 }
  0x1a   :  { %1440 = shalt.err (!%p1437_p10)
}
  0x1b   :  { %s1441_s24 = scalar_lea.vmem %s22_s16, 2048  ;;  %p1446_p12 = scmp.lt.s32.totalorder %s22_s16, %s22_s16 }
  0x1c   :  { %p1442_p11 = scmp.ne.s32.totalorder %s22_s16, %s1441_s24  ;;  %p1447_p13 = scmp.lt.s32.totalorder %s1441_s24, %s1441_s24 }
  0x1e   :  { %p1448_p0 = por %p1447_p13, %p1446_p12 }
  0x20   :  { %p1449_p1 = pnand %p1448_p0, %p1442_p11 }
  0x22   :  { %1452 = shalt.err (!%p1449_p1)
}
  0x23   :  { %s1531_s2 = smov 256   ;;  %s1532_s25 = smov 16  }
  0x24   :  { %27 = dma.hbm_to_vmem [thread:$0]  %s1882_s0, 2048, %s22_s16, [#allocation3], %s1531_s2, %s1531_s2, %s1532_s25  }
  0x25   :  { %s1533_s28 = smov [#allocation7]   ;;  %s1534_s30 = smov [#allocation8]  }
  0x26   :  { %s47_s29 = sshll.u32 %s1533_s28, 4  ;;  %s63_s8 = sshll.u32 %s1534_s30, 4  ;;  %s48_s29 = int_to_ptr.vmem [resolvable:$true] %s47_s29  ;;  %s1608_s8 = int_to_ptr.vmem [resolvable:$true] %s63_s8 }
  0x27   :  { %s1453_s13 = scalar_lea.hbm %s1885_s3, 1024 }
  0x28   :  { %p1454_p2 = scmp.ne.s32.totalorder %s1885_s3, %s1453_s13  ;;  %p1457_p3 = scmp.lt.u32.totalorder %s1453_s13, %s1885_s3 }
  0x2a   :  { %p1459_p4 = pnand %p1457_p3, %p1454_p2 }
  0x2c   :  { %1462 = shalt.err (!%p1459_p4)
}
  0x2d   :  { %s1463_s0 = scalar_lea.vmem %s48_s29, 1024  ;;  %p1468_p6 = scmp.lt.s32.totalorder %s48_s29, %s48_s29 }
  0x2e   :  { %p1464_p5 = scmp.ne.s32.totalorder %s48_s29, %s1463_s0  ;;  %p1469_p7 = scmp.lt.s32.totalorder %s1463_s0, %s1463_s0 }
  0x30   :  { %p1470_p8 = por %p1469_p7, %p1468_p6 }
  0x32   :  { %p1471_p9 = pnand %p1470_p8, %p1464_p5 }
  0x34   :  { %1474 = shalt.err (!%p1471_p9)
}
  0x35   :  { %53 = dma.hbm_to_vmem [thread:$0]  %s1885_s3, 1024, %s48_s29, [#allocation6], %s1528_s11, %s1528_s11, %s1529_s12  }
  0x36   :  { %s1475_s22 = scalar_lea.hbm %s1888_s6, 8192 }
  0x37   :  { %p1476_p10 = scmp.ne.s32.totalorder %s1888_s6, %s1475_s22  ;;  %p1479_p11 = scmp.lt.u32.totalorder %s1475_s22, %s1888_s6 }
  0x39   :  { %p1481_p12 = pnand %p1479_p11, %p1476_p10 }
  0x3b   :  { %1484 = shalt.err (!%p1481_p12)
}
  0x3c   :  { %s1485_s28 = scalar_lea.vmem %s1608_s8, 8192  ;;  %p1490_p0 = scmp.lt.s32.totalorder %s1608_s8, %s1608_s8 }
  0x3d   :  { %p1486_p13 = scmp.ne.s32.totalorder %s1608_s8, %s1485_s28  ;;  %p1491_p1 = scmp.lt.s32.totalorder %s1485_s28, %s1485_s28 }
  0x3f   :  { %p1492_p2 = por %p1491_p1, %p1490_p0 }
  0x41   :  { %p1493_p3 = pnand %p1492_p2, %p1486_p13 }
  0x43   :  { %1496 = shalt.err (!%p1493_p3)
}
  0x44   :  { %69 = dma.hbm_to_vmem [thread:$0]  %s1888_s6, 8192, %s1608_s8, [#allocation9], %s1531_s2, %s1531_s2, %s1532_s25  }
  0x45   :  { %1519 = dma.done.wait [#allocation3], 2048  }
  0x46   :  { %1520 = vsyncadd [#allocation3], 4294965248 }
  0x47   :  { %1521 = dma.done.wait [#allocation6], 2048  }
  0x48   :  { %1522 = vsyncadd [#allocation6], 4294965248 }
  0x49   :  { %1523 = dma.done.wait [#allocation9], 8192  }
  0x4a   :  { %1524 = vsyncadd [#allocation9], 4294959104  ;;  %v1535_v0 = vmov 0.0   ;;  %v83_v1 = vld [vmem:[#allocation2 + $0x8] sm:$0xff]  ;;  %v85_v2 = vld [vmem:[#allocation2 + $0x18] sm:$0xff]  ;;  %vm196_vm0 = vcmask 523264  }
  0x4b   :  { %285 = vmatprep.mubr.f32.mxu0 %v1535_v0  ;;  %v1646_v3 = vld [vmem:[#allocation2] sm:$0xff]  ;;  %v1199_v4 = vpack.c.bf16 %v85_v2, %v83_v1  ;;  %v84_v5 = vld [vmem:[#allocation2 + $0x10] sm:$0xff]  ;;  %v87_v6 = vld [vmem:[#allocation2 + $0x28] sm:$0xff]  ;;  %vm727_vm1 = vcmask 130048  }
  0x4c   :  { %v89_v7 = vld [vmem:[#allocation2 + $0x38] sm:$0xff]  ;;  %v1201_v8 = vpack.c.bf16 %v84_v5, %v1646_v3  ;;  %v86_v10 = vld [vmem:[#allocation2 + $0x20] sm:$0xff]  ;;  %v88_v11 = vld [vmem:[#allocation2 + $0x30] sm:$0xff] }
  0x4d   :  { %v1203_v9 = vpack.c.bf16 %v89_v7, %v87_v6  ;;  %v91_v12 = vld [vmem:[#allocation2 + $0x48] sm:$0xff]  ;;  %1200 = vmatprep.subr.bf16.mxu0 %v1199_v4  ;;  %v93_v13 = vld [vmem:[#allocation2 + $0x58] sm:$0xff]  ;;  %v1205_v14 = vpack.c.bf16 %v88_v11, %v86_v10  ;;  %v90_v16 = vld [vmem:[#allocation2 + $0x40] sm:$0xff] }
  0x4e   :  { %1202 = vmatpush1.bf16.msra.mxu0 %v1201_v8  ;;  %v1207_v15 = vpack.c.bf16 %v93_v13, %v91_v12  ;;  %v92_v17 = vld [vmem:[#allocation2 + $0x50] sm:$0xff]  ;;  %v95_v18 = vld [vmem:[#allocation2 + $0x68] sm:$0xff]  ;;  %v97_v19 = vld [vmem:[#allocation2 + $0x78] sm:$0xff] }
  0x4f   :  { %1204 = vmatprep.subr.bf16.mxu0 %v1203_v9  ;;  %v1209_v20 = vpack.c.bf16 %v92_v17, %v90_v16  ;;  %v1211_v21 = vpack.c.bf16 %v97_v19, %v95_v18  ;;  %v94_v22 = vld [vmem:[#allocation2 + $0x60] sm:$0xff]  ;;  %v96_v23 = vld [vmem:[#allocation2 + $0x70] sm:$0xff]  ;;  %v99_v26 = vld [vmem:[%s1883_s1 + $0x8] sm:$0xff] }
  0x50   :  { %v1213_v24 = vpack.c.bf16 %v96_v23, %v94_v22  ;;  %v98_v25 = vld [vmem:[%s1883_s1] sm:$0xff]  ;;  %v100_v27 = vld [vmem:[%s1883_s1 + $0x10] sm:$0xff]  ;;  %v101_v28 = vld [vmem:[%s1883_s1 + $0x18] sm:$0xff] }
  0x51   :  { %v102_v29 = vld [vmem:[%s1883_s1 + $0x20] sm:$0xff]  ;;  %v103_v30 = vld [vmem:[%s1883_s1 + $0x28] sm:$0xff]  ;;  %v104_v31 = vld [vmem:[%s1883_s1 + $0x30] sm:$0xff] }
  0x52   :  { %1206 = vmatpush1.bf16.msra.mxu0 %v1205_v14  ;;  %v105_v32 = vld [vmem:[%s1883_s1 + $0x38] sm:$0xff]  ;;  %v114_v2 = vld [vmem:[#allocation7] sm:$0xff]  ;;  %v133_v4 = vld [vmem:[#allocation8 + $0x8] sm:$0xff] }
  0x53   :  { %1208 = vmatprep.subr.bf16.mxu0 %v1207_v15  ;;  %1187 = vmatprep.mubr.msk.f32.mxu1 %vm196_vm0, %v114_v2  ;;  %v135_v5 = vld [vmem:[#allocation8 + $0x18] sm:$0xff]  ;;  %v132_v6 = vld [vmem:[#allocation8] sm:$0xff]  ;;  %v134_v8 = vld [vmem:[#allocation8 + $0x10] sm:$0xff] }
  0x54   :  { %v1247_v7 = vpack.c.bf16 %v135_v5, %v133_v4  ;;  %v137_v9 = vld [vmem:[#allocation8 + $0x28] sm:$0xff]  ;;  %v139_v10 = vld [vmem:[#allocation8 + $0x38] sm:$0xff]  ;;  %v1249_v11 = vpack.c.bf16 %v134_v8, %v132_v6  ;;  %v136_v13 = vld [vmem:[#allocation8 + $0x20] sm:$0xff] }
  0x55   :  { %v1251_v12 = vpack.c.bf16 %v139_v10, %v137_v9  ;;  %v138_v14 = vld [vmem:[#allocation8 + $0x30] sm:$0xff]  ;;  %v141_v15 = vld [vmem:[#allocation8 + $0x48] sm:$0xff]  ;;  %v143_v16 = vld [vmem:[#allocation8 + $0x58] sm:$0xff] }
  0x56   :  { %1210 = vmatpush1.bf16.msra.mxu0 %v1209_v20  ;;  %v1253_v17 = vpack.c.bf16 %v138_v14, %v136_v13  ;;  %v1255_v18 = vpack.c.bf16 %v143_v16, %v141_v15  ;;  %v140_v19 = vld [vmem:[#allocation8 + $0x40] sm:$0xff]  ;;  %v142_v20 = vld [vmem:[#allocation8 + $0x50] sm:$0xff]  ;;  %v147_v22 = vld [vmem:[#allocation8 + $0x78] sm:$0xff] }
  0x57   :  { %1212 = vmatprep.subr.bf16.mxu0 %v1211_v21  ;;  %v145_v21 = vld [vmem:[#allocation8 + $0x68] sm:$0xff]  ;;  %v1257_v23 = vpack.c.bf16 %v142_v20, %v140_v19  ;;  %v156_v5 = vld [vmem:[#allocation8 + $0xc0] sm:$0xff]  ;;  %v158_v6 = vld [vmem:[#allocation8 + $0xd0] sm:$0xff] }
  0x58   :  { %v163_v8 = vld [vmem:[#allocation8 + $0xf8] sm:$0xff]  ;;  %v1273_v9 = vpack.c.bf16 %v158_v6, %v156_v5  ;;  %v165_v13 = vld [vmem:[#allocation8 + $0x108] sm:$0xff] }
  0x59   :  { %v167_v14 = vld [vmem:[#allocation8 + $0x118] sm:$0xff]  ;;  %v169_v19 = vld [vmem:[#allocation8 + $0x128] sm:$0xff] }
  0x5a   :  { %1214 = vmatpush1.bf16.msra.mxu0 %v1213_v24  ;;  %v1259_v24 = vpack.c.bf16 %v147_v22, %v145_v21  ;;  %v1279_v16 = vpack.c.bf16 %v167_v14, %v165_v13  ;;  %v171_v20 = vld [vmem:[#allocation8 + $0x138] sm:$0xff] }
  0x5b   :  { %1248 = vmatprep.subr.bf16.mxu0 %v1247_v7  ;;  %v161_v7 = vld [vmem:[#allocation8 + $0xe8] sm:$0xff]  ;;  %v1283_v22 = vpack.c.bf16 %v171_v20, %v169_v19  ;;  %v117_v19 = vld [vmem:[#allocation7 + $0x18] sm:$0xff]  ;;  %v118_v20 = vld [vmem:[#allocation7 + $0x20] sm:$0xff] }
  0x5c   :  { %v1275_v10 = vpack.c.bf16 %v163_v8, %v161_v7 }
  0x5d   :  { %1109 = vmatmul.mubr.msk.f32.vlgmr.msra.gmra.mrb[0].mxu0 %vm196_vm0, %v98_v25  ;;  %v144_v25 = vld [vmem:[#allocation8 + $0x60] sm:$0xff] }
  0x5e   :  { %291 = vmatprep.mubr.f32.mxu0 %v1535_v0  ;;  %1250 = vmatpush1.bf16.msra.mxu0 %v1249_v11  ;;  %v160_v11 = vld [vmem:[#allocation8 + $0xe0] sm:$0xff] }
  0x5f   :  { %1252 = vmatprep.subr.bf16.mxu0 %v1251_v12  ;;  %v162_v12 = vld [vmem:[#allocation8 + $0xf0] sm:$0xff] }
  0x60   :  { %v1277_v15 = vpack.c.bf16 %v162_v12, %v160_v11 }
  0x61   :  { %1110 = vmatmul.mubr.msk.f32.gmra.mrb[2].mxu0 %vm196_vm0, %v99_v26  ;;  %v146_v26 = vld [vmem:[#allocation8 + $0x70] sm:$0xff] }
  0x62   :  { %297 = vmatprep.mubr.f32.mxu0 %v1535_v0  ;;  %1254 = vmatpush1.bf16.msra.mxu0 %v1253_v17  ;;  %v164_v17 = vld [vmem:[#allocation8 + $0x100] sm:$0xff] }
  0x63   :  { %1256 = vmatprep.subr.bf16.mxu0 %v1255_v18  ;;  %v166_v18 = vld [vmem:[#allocation8 + $0x110] sm:$0xff] }
  0x64   :  { %v1281_v21 = vpack.c.bf16 %v166_v18, %v164_v17  ;;  %v115_v17 = vld [vmem:[#allocation7 + $0x8] sm:$0xff]  ;;  %v116_v18 = vld [vmem:[#allocation7 + $0x10] sm:$0xff] }
  0x65   :  { %1111 = vmatmul.mubr.msk.f32.gmra.mrb[4].mxu0 %vm196_vm0, %v100_v27  ;;  %v149_v27 = vld [vmem:[#allocation8 + $0x88] sm:$0xff] }
  0x66   :  { %303 = vmatprep.mubr.f32.mxu0 %v1535_v0  ;;  %1258 = vmatpush1.bf16.msra.mxu0 %v1257_v23  ;;  %v168_v23 = vld [vmem:[#allocation8 + $0x120] sm:$0xff] }
  0x67   :  { %1260 = vmatprep.subr.bf16.mxu0 %v1259_v24  ;;  %v170_v24 = vld [vmem:[#allocation8 + $0x130] sm:$0xff] }
  0x69   :  { %1112 = vmatmul.mubr.msk.f32.gmra.mrb[6].mxu0 %vm196_vm0, %v101_v28  ;;  %v151_v28 = vld [vmem:[#allocation8 + $0x98] sm:$0xff] }
  0x6a   :  { %309 = vmatprep.mubr.f32.mxu0 %v1535_v0 }
  0x6d   :  { %1113 = vmatmul.mubr.msk.f32.gmra.mrb[8].mxu0 %vm196_vm0, %v102_v29  ;;  %v1261_v29 = vpack.c.bf16 %v146_v26, %v144_v25  ;;  %v173_v25 = vld [vmem:[#allocation8 + $0x148] sm:$0xff]  ;;  %v175_v26 = vld [vmem:[#allocation8 + $0x158] sm:$0xff] }
  0x6e   :  { %315 = vmatprep.mubr.f32.mxu0 %v1535_v0 }
  0x6f   :  { %1262 = vmatpush1.bf16.msra.mxu0 %v1261_v29  ;;  %v172_v29 = vld [vmem:[#allocation8 + $0x140] sm:$0xff] }
  0x71   :  { %1114 = vmatmul.mubr.msk.f32.gmra.mrb[10].mxu0 %vm196_vm0, %v103_v30  ;;  %v1263_v30 = vpack.c.bf16 %v151_v28, %v149_v27  ;;  %v1285_v27 = vpack.c.bf16 %v170_v24, %v168_v23  ;;  %v1287_v28 = vpack.c.bf16 %v175_v26, %v173_v25  ;;  %v180_v24 = vld [vmem:[#allocation8 + $0x180] sm:$0xff]  ;;  %v182_v25 = vld [vmem:[#allocation8 + $0x190] sm:$0xff] }
  0x72   :  { %321 = vmatprep.mubr.f32.mxu0 %v1535_v0  ;;  %v1297_v26 = vpack.c.bf16 %v182_v25, %v180_v24 }
  0x73   :  { %1264 = vmatprep.subr.bf16.mxu0 %v1263_v30  ;;  %v174_v30 = vld [vmem:[#allocation8 + $0x150] sm:$0xff] }
  0x75   :  { %1115 = vmatmul.mubr.msk.f32.gmra.mrb[12].mxu0 %vm196_vm0, %v104_v31  ;;  %v148_v31 = vld [vmem:[#allocation8 + $0x80] sm:$0xff] }
  0x76   :  { %327 = vmatprep.mubr.f32.mxu0 %v1535_v0 }
  0x79   :  { %1116 = vmatmul.mubr.msk.f32.gmra.mrb[14].mxu0 %vm196_vm0, %v105_v32  ;;  %v150_v32 = vld [vmem:[#allocation8 + $0x90] sm:$0xff] }
 0x130   :  { %v1688_v33 = vpop.f32.mrb[0].mxu0 }
 0x131   :  { %v1690_v34 = vpop.f32.mrb[1].mxu0 }
 0x132   :  { %v334_v35 = vadd.f32 %v1690_v34, %v1688_v33 }
 0x134   :  { %335 = vadd.xlane.f32.xlu0 %v334_v35  ;;  %v1694_v36 = vpop.f32.mrb[2].mxu0  ;;  %v153_v35 = vld [vmem:[#allocation8 + $0xa8] sm:$0xff] }
 0x135   :  { %v1233_v37 = vpack.c.bf16 %v1694_v36, %v1688_v33  ;;  %v1698_v38 = vpop.f32.mrb[3].mxu0 }
 0x136   :  { %v1231_v39 = vpack.c.bf16 %v1698_v38, %v1690_v34  ;;  %v337_v40 = vadd.f32 %v1698_v38, %v1694_v36 }
 0x138   :  { %338 = vadd.xlane.f32.xlu0 %v337_v40  ;;  %v1704_v41 = vpop.f32.mrb[4].mxu0  ;;  %v155_v40 = vld [vmem:[#allocation8 + $0xb8] sm:$0xff] }
 0x139   :  { %v1706_v42 = vpop.f32.mrb[5].mxu0 }
 0x13a   :  { %v340_v43 = vadd.f32 %v1706_v42, %v1704_v41 }
 0x13c   :  { %341 = vadd.xlane.f32.xlu1 %v340_v43  ;;  %v1710_v44 = vpop.f32.mrb[6].mxu0  ;;  %v1265_v43 = vpack.c.bf16 %v150_v32, %v148_v31  ;;  %v177_v31 = vld [vmem:[#allocation8 + $0x168] sm:$0xff]  ;;  %v179_v32 = vld [vmem:[#allocation8 + $0x178] sm:$0xff] }
 0x13d   :  { %v1237_v45 = vpack.c.bf16 %v1710_v44, %v1704_v41  ;;  %v1714_v46 = vpop.f32.mrb[7].mxu0 }
 0x13e   :  { %v1235_v47 = vpack.c.bf16 %v1714_v46, %v1706_v42  ;;  %v343_v48 = vadd.f32 %v1714_v46, %v1710_v44  ;;  %1266 = vmatpush1.bf16.msra.mxu0 %v1265_v43 }
 0x140   :  { %344 = vadd.xlane.f32.xlu1 %v343_v48  ;;  %v1720_v49 = vpop.f32.mrb[8].mxu0  ;;  %v1267_v48 = vpack.c.bf16 %v155_v40, %v153_v35  ;;  %v1289_v35 = vpack.c.bf16 %v174_v30, %v172_v29  ;;  %v1291_v40 = vpack.c.bf16 %v179_v32, %v177_v31  ;;  %v184_v30 = vld [vmem:[#allocation8 + $0x1a0] sm:$0xff]  ;;  %v186_v31 = vld [vmem:[#allocation8 + $0x1b0] sm:$0xff] }
 0x141   :  { %v1722_v50 = vpop.f32.mrb[9].mxu0  ;;  %v1301_v32 = vpack.c.bf16 %v186_v31, %v184_v30 }
 0x142   :  { %v346_v51 = vadd.f32 %v1722_v50, %v1720_v49  ;;  %1268 = vmatprep.subr.bf16.mxu0 %v1267_v48 }
 0x144   :  { %347 = vadd.xlane.f32.xlu0 %v346_v51  ;;  %v1726_v52 = vpop.f32.mrb[10].mxu0  ;;  %v152_v51 = vld [vmem:[#allocation8 + $0xa0] sm:$0xff] }
 0x145   :  { %v1241_v53 = vpack.c.bf16 %v1726_v52, %v1720_v49  ;;  %v1730_v54 = vpop.f32.mrb[11].mxu0 }
 0x146   :  { %v1239_v55 = vpack.c.bf16 %v1730_v54, %v1722_v50  ;;  %v349_v56 = vadd.f32 %v1730_v54, %v1726_v52 }
 0x148   :  { %350 = vadd.xlane.f32.xlu1 %v349_v56  ;;  %v1736_v57 = vpop.f32.mrb[12].mxu0  ;;  %v154_v56 = vld [vmem:[#allocation8 + $0xb0] sm:$0xff] }
 0x149   :  { %v1738_v58 = vpop.f32.mrb[13].mxu0  ;;  %v1269_v2 = vpack.c.bf16 %v154_v56, %v152_v51 }
 0x14a   :  { %v352_v59 = vadd.f32 %v1738_v58, %v1736_v57 }
 0x14b   :  { %1270 = vmatpush1.bf16.msra.mxu0 %v1269_v2 }
 0x14c   :  { %353 = vadd.xlane.f32.xlu0 %v352_v59  ;;  %v1742_v60 = vpop.f32.mrb[14].mxu0  ;;  %v157_v59 = vld [vmem:[#allocation8 + $0xc8] sm:$0xff] }
 0x14d   :  { %v1245_v61 = vpack.c.bf16 %v1742_v60, %v1736_v57  ;;  %v1746_v62 = vpop.f32.mrb[15].mxu0 }
 0x14e   :  { %v1243_v63 = vpack.c.bf16 %v1746_v62, %v1738_v58  ;;  %v355_v1 = vadd.f32 %v1746_v62, %v1742_v60 }
 0x150   :  { %356 = vadd.xlane.f32.xlu1 %v355_v1  ;;  %v159_v1 = vld [vmem:[#allocation8 + $0xd8] sm:$0xff] }
 0x151   :  { %v1271_v4 = vpack.c.bf16 %v159_v1, %v157_v59 }
 0x153   :  { %1272 = vmatprep.subr.bf16.mxu0 %v1271_v4 }
 0x154   :  { %1274 = vmatpush1.bf16.msra.mxu0 %v1273_v9 }
 0x155   :  { %1276 = vmatprep.subr.bf16.mxu0 %v1275_v10 }
 0x158   :  { %1278 = vmatpush1.bf16.msra.mxu0 %v1277_v15 }
 0x159   :  { %1280 = vmatprep.subr.bf16.mxu0 %v1279_v16 }
 0x15c   :  { %1282 = vmatpush1.bf16.msra.mxu0 %v1281_v21  ;;  %v181_v21 = vld [vmem:[#allocation8 + $0x188] sm:$0xff] }
 0x15d   :  { %1284 = vmatprep.subr.bf16.mxu0 %v1283_v22  ;;  %v183_v22 = vld [vmem:[#allocation8 + $0x198] sm:$0xff] }
 0x15e   :  { %v1295_v23 = vpack.c.bf16 %v183_v22, %v181_v21 }
 0x160   :  { %1286 = vmatpush1.bf16.msra.mxu0 %v1285_v27  ;;  %v185_v27 = vld [vmem:[#allocation8 + $0x1a8] sm:$0xff] }
 0x161   :  { %1288 = vmatprep.subr.bf16.mxu0 %v1287_v28  ;;  %v187_v28 = vld [vmem:[#allocation8 + $0x1b8] sm:$0xff] }
 0x162   :  { %v1299_v29 = vpack.c.bf16 %v187_v28, %v185_v27 }
 0x164   :  { %1290 = vmatpush1.bf16.msra.mxu0 %v1289_v35  ;;  %v189_v35 = vld [vmem:[#allocation8 + $0x1c8] sm:$0xff] }
 0x165   :  { %1292 = vmatprep.subr.bf16.mxu0 %v1291_v40  ;;  %v191_v40 = vld [vmem:[#allocation8 + $0x1d8] sm:$0xff] }
 0x1c1   :  { %v336_v43 = vpop.xlane.xlu0 %335 }
 0x1c2   :  { %v358_v51 = vmul.f32 0.00390625, %v336_v43  ;;  %v1303_v43 = vpack.c.bf16 %v191_v40, %v189_v35 }
 0x1c5   :  { %v339_v48 = vpop.xlane.xlu0 %338 }
 0x1c6   :  { %v359_v56 = vmul.f32 0.00390625, %v339_v48  ;;  %v188_v48 = vld [vmem:[#allocation8 + $0x1c0] sm:$0xff] }
 0x1c8   :  { %v1215_v59 = vpack.c.bf16 %v359_v56, %v358_v51  ;;  %v190_v51 = vld [vmem:[#allocation8 + $0x1d0] sm:$0xff] }
 0x1c9   :  { %v342_v1 = vpop.xlane.xlu1 %341  ;;  %v1305_v56 = vpack.c.bf16 %v190_v51, %v188_v48 }
 0x1ca   :  { %1216 = vmatprep.subr.bf16.mxu1 %v1215_v59  ;;  %v360_v4 = vmul.f32 0.00390625, %v342_v1  ;;  %v195_v1 = vld [vmem:[#allocation8 + $0x1f8] sm:$0xff] }
 0x1cb   :  { %1218 = vmatpush3.bf16.msra.mxu1 %v1215_v59  ;;  %v193_v59 = vld [vmem:[#allocation8 + $0x1e8] sm:$0xff] }
 0x1cd   :  { %v345_v2 = vpop.xlane.xlu1 %344 }
 0x1ce   :  { %v361_v5 = vmul.f32 0.00390625, %v345_v2  ;;  %v1307_v2 = vpack.c.bf16 %v195_v1, %v193_v59 }
 0x1d0   :  { %v1219_v6 = vpack.c.bf16 %v361_v5, %v360_v4  ;;  %v192_v4 = vld [vmem:[#allocation8 + $0x1e0] sm:$0xff]  ;;  %v194_v5 = vld [vmem:[#allocation8 + $0x1f0] sm:$0xff] }
 0x1d1   :  { %v348_v7 = vpop.xlane.xlu0 %347 }
 0x1d2   :  { %1220 = vmatprep.subr.bf16.mxu1 %v1219_v6  ;;  %v362_v9 = vmul.f32 0.00390625, %v348_v7  ;;  %v1536_v7 = vmov 0  }
 0x1d3   :  { %1222 = vmatpush3.bf16.msra.mxu1 %v1219_v6  ;;  %v1309_v6 = vpack.c.bf16 %v194_v5, %v192_v4  ;;  %1345 = vset.pattern.permute.xlu1 %v1536_v7 }
 0x1d4   :  { %1344 = vset.pattern.permute.xlu0 %v1536_v7 }
 0x1d5   :  { %v351_v8 = vpop.xlane.xlu1 %350 }
 0x1d6   :  { %v363_v10 = vmul.f32 0.00390625, %v351_v8 }
 0x1d8   :  { %v1223_v11 = vpack.c.bf16 %v363_v10, %v362_v9 }
 0x1d9   :  { %v354_v12 = vpop.xlane.xlu0 %353 }
 0x1da   :  { %1224 = vmatprep.subr.bf16.mxu1 %v1223_v11  ;;  %v364_v14 = vmul.f32 0.00390625, %v354_v12 }
 0x1db   :  { %1226 = vmatpush3.bf16.msra.mxu1 %v1223_v11 }
 0x1dd   :  { %v357_v13 = vpop.xlane.xlu1 %356 }
 0x1de   :  { %v365_v15 = vmul.f32 0.00390625, %v357_v13 }
 0x1e0   :  { %v1227_v16 = vpack.c.bf16 %v365_v15, %v364_v14 }
 0x1e2   :  { %1228 = vmatprep.subr.bf16.mxu1 %v1227_v16 }
 0x1e3   :  { %1230 = vmatpush3.bf16.msra.mxu1 %v1227_v16 }
 0x1e4   :  { %1232 = vmatprep.subr.bf16.mxu1 %v1231_v39  ;;  %v119_v39 = vld [vmem:[#allocation7 + $0x28] sm:$0xff] }
 0x1e6   :  { %1188 = vmatmul.mubr.msk.f32.vlgmr.msra.gmra.mrb[0].mxu1 %vm196_vm0, %v115_v17 }
 0x1e7   :  { %1234 = vmatpush1.bf16.msra.mxu1 %v1233_v37  ;;  %1190 = vmatprep.mubr.msk.f32.mxu1 %vm196_vm0, %v116_v18  ;;  %v120_v37 = vld [vmem:[#allocation7 + $0x30] sm:$0xff] }
 0x1e8   :  { %1236 = vmatprep.subr.bf16.mxu1 %v1235_v47  ;;  %v121_v47 = vld [vmem:[#allocation7 + $0x38] sm:$0xff] }
 0x1ea   :  { %1191 = vmatmul.mubr.msk.f32.gmra.mrb[2].mxu1 %vm196_vm0, %v117_v19 }
 0x1eb   :  { %1238 = vmatpush1.bf16.msra.mxu1 %v1237_v45  ;;  %1193 = vmatprep.mubr.msk.f32.mxu1 %vm196_vm0, %v118_v20  ;;  %v122_v45 = vld [vmem:[%s1886_s4] sm:$0xff] }
 0x1ec   :  { %1240 = vmatprep.subr.bf16.mxu1 %v1239_v55  ;;  %v176_v55 = vld [vmem:[#allocation8 + $0x160] sm:$0xff] }
 0x1ee   :  { %1194 = vmatmul.mubr.msk.f32.gmra.mrb[4].mxu1 %vm196_vm0, %v119_v39 }
 0x1ef   :  { %1242 = vmatpush1.bf16.msra.mxu1 %v1241_v53  ;;  %1196 = vmatprep.mubr.msk.f32.mxu1 %vm196_vm0, %v120_v37  ;;  %v123_v53 = vld [vmem:[%s1886_s4 + $0x8] sm:$0xff] }
 0x1f0   :  { %1244 = vmatprep.subr.bf16.mxu1 %v1243_v63 }
 0x1f2   :  { %1197 = vmatmul.mubr.msk.f32.gmra.mrb[6].mxu1 %vm196_vm0, %v121_v47 }
 0x1f3   :  { %1246 = vmatpush1.bf16.msra.mxu1 %v1245_v61  ;;  %613 = vmatprep.mubr.f32.mxu1 %v1535_v0  ;;  %v178_v61 = vld [vmem:[#allocation8 + $0x170] sm:$0xff] }
 0x1f4   :  { %v1293_v63 = vpack.c.bf16 %v178_v61, %v176_v55 }
 0x1f6   :  { %1133 = vmatmul.mubr.msk.f32.vlgmr.msra.gmra.mrb[8].mxu1 %vm196_vm0, %v122_v45  ;;  %1294 = vmatpush1.bf16.msra.mxu0 %v1293_v63 }
 0x1f7   :  { %619 = vmatprep.mubr.f32.mxu1 %v1535_v0  ;;  %1296 = vmatprep.subr.bf16.mxu0 %v1295_v23 }
 0x1fa   :  { %1134 = vmatmul.mubr.msk.f32.gmra.mrb[10].mxu1 %vm196_vm0, %v123_v53  ;;  %1298 = vmatpush1.bf16.msra.mxu0 %v1297_v26 }
 0x1fb   :  { %828 = vmatprep.mubr.f32.mxu1 %v1535_v0  ;;  %1300 = vmatprep.subr.bf16.mxu0 %v1299_v29 }
 0x1fe   :  { %1302 = vmatpush1.bf16.msra.mxu0 %v1301_v32 }
 0x1ff   :  { %1304 = vmatprep.subr.bf16.mxu0 %v1303_v43 }
 0x202   :  { %1306 = vmatpush1.bf16.msra.mxu0 %v1305_v56 }
 0x203   :  { %1308 = vmatprep.subr.bf16.mxu0 %v1307_v2 }
 0x206   :  { %1310 = vmatpush1.bf16.msra.mxu0 %v1309_v6 }
 0x2b9   :  { %v1189_v8 = vpop.f32.mrb[0].mxu1 }
 0x2ba   :  { %v1126_v9 = vmul.f32 -1.442695, %v1189_v8  ;;  %v456_v10 = vpop.f32.mrb[1].mxu1 }
 0x2bb   :  { %v1125_v11 = vmul.f32 -1.442695, %v456_v10 }
 0x2bc   :  { %1346 = vpow2.f32 %v1126_v9 }
 0x2bd   :  { %1348 = vpow2.f32 %v1125_v11  ;;  %v1192_v12 = vpop.f32.mrb[2].mxu1 }
 0x2be   :  { %v1128_v13 = vmul.f32 -1.442695, %v1192_v12  ;;  %v466_v14 = vpop.f32.mrb[3].mxu1 }
 0x2bf   :  { %v1127_v15 = vmul.f32 -1.442695, %v466_v14 }
 0x2c0   :  { %1350 = vpow2.f32 %v1128_v13 }
 0x2c1   :  { %1352 = vpow2.f32 %v1127_v15  ;;  %v1195_v16 = vpop.f32.mrb[4].mxu1 }
 0x2c2   :  { %v1130_v17 = vmul.f32 -1.442695, %v1195_v16  ;;  %v476_v18 = vpop.f32.mrb[5].mxu1 }
 0x2c3   :  { %v1129_v19 = vmul.f32 -1.442695, %v476_v18 }
 0x2c4   :  { %1354 = vpow2.f32 %v1130_v17 }
 0x2c5   :  { %v1198_v20 = vpop.f32.mrb[6].mxu1  ;;  %1356 = vpow2.f32 %v1129_v19 }
 0x2c6   :  { %v1347_v39 = vpop.eup %1346  ;;  %v486_v37 = vpop.f32.mrb[7].mxu1  ;;  %v1132_v24 = vmul.f32 -1.442695, %v1198_v20 }
 0x2c7   :  { %v1349_v47 = vpop.eup %1348  ;;  %v520_v45 = vadd.f32 1.0, %v1347_v39  ;;  %v1131_v55 = vmul.f32 -1.442695, %v486_v37 }
 0x2c8   :  { %v519_v53 = vadd.f32 1.0, %v1349_v47 }
 0x2c9   :  { %1358 = vrcp.f32 %v520_v45  ;;  %v615_v61 = vpop.f32.mrb[8].mxu1 }
 0x2ca   :  { %v1351_v63 = vpop.eup %1350  ;;  %1360 = vrcp.f32 %v519_v53  ;;  %v617_v21 = vpop.f32.mrb[9].mxu1 }
 0x2cb   :  { %v1353_v22 = vpop.eup %1352  ;;  %v522_v23 = vadd.f32 1.0, %v1351_v63  ;;  %690 = vmatprep.mubr.f32.mxu0 %v617_v21  ;;  %1362 = vpow2.f32 %v1131_v55  ;;  %v124_v63 = vld [vmem:[%s1887_s5] sm:$0xff]  ;;  %v126_v21 = vld [vmem:[%s1887_s5 + $0x10] sm:$0xff] }
 0x2cc   :  { %691 = vmatmul.mubr.f32.vlgmr.msra.gmra.mrb[16].mxu0 %v615_v61  ;;  %v521_v25 = vadd.f32 1.0, %v1353_v22  ;;  %v125_v22 = vld [vmem:[%s1887_s5 + $0x8] sm:$0xff] }
 0x2cd   :  { %1364 = vrcp.f32 %v522_v23  ;;  %v621_v26 = vpop.f32.mrb[10].mxu1  ;;  %v127_v23 = vld [vmem:[%s1887_s5 + $0x18] sm:$0xff] }
 0x2ce   :  { %v1355_v27 = vpop.eup %1354  ;;  %v623_v28 = vpop.f32.mrb[11].mxu1  ;;  %1366 = vpow2.f32 %v1132_v24  ;;  %v128_v24 = vld [vmem:[%s1887_s5 + $0x20] sm:$0xff] }
 0x2cf   :  { %696 = vmatprep.mubr.f32.mxu0 %v623_v28  ;;  %1368 = vrcp.f32 %v521_v25  ;;  %v524_v29 = vadd.f32 1.0, %v1355_v27  ;;  %v1357_v30 = vpop.eup %1356  ;;  %v129_v25 = vld [vmem:[%s1887_s5 + $0x28] sm:$0xff]  ;;  %v131_v27 = vld [vmem:[%s1887_s5 + $0x38] sm:$0xff] }
 0x2d0   :  { %697 = vmatmul.mubr.f32.gmra.mrb[18].mxu0 %v621_v26  ;;  %v523_v35 = vadd.f32 1.0, %v1357_v30  ;;  %v130_v26 = vld [vmem:[%s1887_s5 + $0x30] sm:$0xff]  ;;  %s1537_s5 = smov [#allocation10]  }
 0x2d1   :  { %816 = vmatprep.mubr.f32.mxu0 %v1535_v0  ;;  %1370 = vrcp.f32 %v524_v29  ;;  %s1095_s15 = sshll.u32 %s1537_s5, 4  ;;  %s1096_s15 = int_to_ptr.vmem [resolvable:$true] %s1095_s15 }
 0x2d2   :  { %1372 = vrcp.f32 %v523_v35  ;;  %s1497_s17 = scalar_lea.vmem %s1096_s15, 2048  ;;  %p1502_p5 = scmp.lt.s32.totalorder %s1096_s15, %s1096_s15 }
 0x2d3   :  { %v1359_v31 = vpop.eup %1358  ;;  %p1498_p4 = scmp.ne.s32.totalorder %s1096_s15, %s1497_s17  ;;  %p1503_p6 = scmp.lt.s32.totalorder %s1497_s17, %s1497_s17 }
 0x2d4   :  { %v1361_v32 = vpop.eup %1360  ;;  %872 = vperm.xlu1 %1345, %v1359_v31  }
 0x2d5   :  { %867 = vperm.xlu0 %1344, %v1361_v32   ;;  %v1363_v40 = vpop.eup %1362  ;;  %p1504_p7 = por %p1503_p6, %p1502_p5 }
 0x2d6   :  { %v525_v48 = vadd.f32 1.0, %v1363_v40 }
 0x2d7   :  { %v1365_v43 = vpop.eup %1364  ;;  %p1505_p8 = pnand %p1504_p7, %p1498_p4 }
 0x2d8   :  { %882 = vperm.xlu1 %1345, %v1365_v43   ;;  %v1367_v51 = vpop.eup %1366  ;;  %1374 = vrcp.f32 %v525_v48 }
 0x2d9   :  { %v1369_v56 = vpop.eup %1368  ;;  %v526_v59 = vadd.f32 1.0, %v1367_v51 }
 0x2db   :  { %v1371_v1 = vpop.eup %1370  ;;  %1376 = vrcp.f32 %v526_v59 }
 0x2dc   :  { %877 = vperm.xlu1 %1345, %v1369_v56   ;;  %v1373_v2 = vpop.eup %1372 }
 0x2e0   :  { %892 = vperm.xlu1 %1345, %v1371_v1  }
 0x2e2   :  { %v1375_v4 = vpop.eup %1374 }
 0x2e4   :  { %887 = vperm.xlu1 %1345, %v1373_v2  }
 0x2e5   :  { %v1377_v5 = vpop.eup %1376 }
 0x2e8   :  { %897 = vperm.xlu1 %1345, %v1375_v4  }
 0x2ec   :  { %902 = vperm.xlu1 %1345, %v1377_v5  }
 0x353   :  { %v873_v28 = vpop.permute.xlu1 %872 }
 0x354   :  { %v868_v31 = vpop.permute.xlu0 %867 }
 0x357   :  { %v883_v29 = vpop.permute.xlu1 %882 }
 0x35b   :  { %v878_v30 = vpop.permute.xlu1 %877 }
 0x35f   :  { %v893_v56 = vpop.permute.xlu1 %892 }
 0x39f   :  { %v692_v6 = vpop.f32.mrb[16].mxu0 }
 0x3a0   :  { %v1135_v7 = vmul.f32 -1.442695, %v692_v6  ;;  %v694_v8 = vpop.f32.mrb[17].mxu0 }
 0x3a1   :  { %v1136_v9 = vmul.f32 -1.442695, %v694_v8 }
 0x3a2   :  { %1378 = vpow2.f32 %v1135_v7 }
 0x3a3   :  { %1380 = vpow2.f32 %v1136_v9  ;;  %v698_v10 = vpop.f32.mrb[18].mxu0 }
 0x3a4   :  { %v1137_v11 = vmul.f32 -1.442695, %v698_v10  ;;  %v700_v12 = vpop.f32.mrb[19].mxu0 }
 0x3a5   :  { %v1138_v13 = vmul.f32 -1.442695, %v700_v12 }
 0x3a6   :  { %1382 = vpow2.f32 %v1137_v11 }
 0x3a7   :  { %1384 = vpow2.f32 %v1138_v13 }
 0x3ac   :  { %v1379_v14 = vpop.eup %1378 }
 0x3ad   :  { %v1381_v15 = vpop.eup %1380  ;;  %v715_v16 = vadd.f32 1.0, %v1379_v14 }
 0x3ae   :  { %v716_v17 = vadd.f32 1.0, %v1381_v15 }
 0x3af   :  { %1386 = vrcp.f32 %v715_v16 }
 0x3b0   :  { %v1383_v18 = vpop.eup %1382  ;;  %1388 = vrcp.f32 %v716_v17  ;;  %v888_v17 = vpop.permute.xlu1 %887 }
 0x3b1   :  { %v1385_v19 = vpop.eup %1384  ;;  %v717_v20 = vadd.f32 1.0, %v1383_v18 }
 0x3b2   :  { %v718_v39 = vadd.f32 1.0, %v1385_v19 }
 0x3b3   :  { %1390 = vrcp.f32 %v717_v20 }
 0x3b4   :  { %1392 = vrcp.f32 %v718_v39 }
 0x3b9   :  { %v1387_v37 = vpop.eup %1386 }
 0x3ba   :  { %v1389_v47 = vpop.eup %1388 }
 0x3bd   :  { %v1391_v45 = vpop.eup %1390 }
 0x3be   :  { %v1393_v53 = vpop.eup %1392  ;;  %v1313_v55 = vpack.c.bf16 %v1391_v45, %v1387_v37 }
 0x3bf   :  { %v1311_v61 = vpack.c.bf16 %v1393_v53, %v1389_v47 }
 0x3c1   :  { %1312 = vmatprep.subr.bf16.mxu0 %v1311_v61  ;;  %1331 = vmatprep.subr.bf16.mxu1 %v1311_v61 }
 0x3c2   :  { %1314 = vmatpush1.bf16.msra.mxu0 %v1313_v55  ;;  %1332 = vmatpush1.bf16.msra.mxu1 %v1313_v55 }
 0x3c5   :  { %1139 = vmatmul.mubr.msk.f32.vlgmr.msra.gmra.mrb[20].mxu0 %vm727_vm1, %v124_v63  ;;  %1141 = vmatmul.mubr.msk.f32.vlgmr.msra.gmra.mrb[12].mxu1 %vm727_vm1, %v126_v21 }
 0x3c6   :  { %822 = vmatprep.mubr.f32.mxu0 %v1535_v0  ;;  %834 = vmatprep.mubr.f32.mxu1 %v1535_v0 }
 0x3c9   :  { %1140 = vmatmul.mubr.msk.f32.gmra.mrb[22].mxu0 %vm727_vm1, %v125_v22  ;;  %1142 = vmatmul.mubr.msk.f32.gmra.mrb[14].mxu1 %vm727_vm1, %v127_v23 }
 0x3ca   :  { %840 = vmatprep.mubr.f32.mxu1 %v1535_v0 }
 0x3cd   :  { %1143 = vmatmul.mubr.msk.f32.gmra.mrb[16].mxu1 %vm727_vm1, %v128_v24 }
 0x3ce   :  { %846 = vmatprep.mubr.f32.mxu1 %v1535_v0 }
 0x3d1   :  { %1144 = vmatmul.mubr.msk.f32.gmra.mrb[18].mxu1 %vm727_vm1, %v129_v25 }
 0x3d2   :  { %852 = vmatprep.mubr.f32.mxu1 %v1535_v0 }
 0x3d5   :  { %1145 = vmatmul.mubr.msk.f32.gmra.mrb[20].mxu1 %vm727_vm1, %v130_v26 }
 0x3d6   :  { %858 = vmatprep.mubr.f32.mxu1 %v1535_v0 }
 0x3d9   :  { %1146 = vmatmul.mubr.msk.f32.gmra.mrb[22].mxu1 %vm727_vm1, %v131_v27 }
 0x3da   :  { %1025 = vmatprep.mubr.f32.mxu1 %v1535_v0 }
 0x498   :  { %v818_v32 = vpop.f32.mrb[20].mxu0  ;;  %v830_v35 = vpop.f32.mrb[12].mxu1 }
 0x499   :  { %v905_v40 = vadd.f32 %v868_v31, %v818_v32  ;;  %v909_v43 = vadd.f32 %v878_v30, %v830_v35  ;;  %v820_v48 = vpop.f32.mrb[21].mxu0  ;;  %v832_v51 = vpop.f32.mrb[13].mxu1 }
 0x49a   :  { %v906_v59 = vadd.f32 %v868_v31, %v820_v48  ;;  %v910_v1 = vadd.f32 %v878_v30, %v832_v51  ;;  %v112_v48 = vld [vmem:[#allocation5 + $0x30] sm:$0xff]  ;;  %v113_v51 = vld [vmem:[#allocation5 + $0x38] sm:$0xff] }
 0x49b   :  { %v921_v2 = vmul.f32 %v905_v40, %v1688_v33  ;;  %v925_v4 = vmul.f32 %v909_v43, %v1704_v41  ;;  %v106_v40 = vld [vmem:[#allocation5] sm:$0xff]  ;;  %v111_v43 = vld [vmem:[#allocation5 + $0x28] sm:$0xff] }
 0x49c   :  { %v922_v5 = vmul.f32 %v906_v59, %v1690_v34  ;;  %v926_v6 = vmul.f32 %v910_v1, %v1706_v42  ;;  %v824_v7 = vpop.f32.mrb[22].mxu0  ;;  %v836_v8 = vpop.f32.mrb[14].mxu1 }
 0x49d   :  { %v907_v9 = vadd.f32 %v873_v28, %v824_v7  ;;  %v911_v10 = vadd.f32 %v883_v29, %v836_v8  ;;  %v826_v11 = vpop.f32.mrb[23].mxu0  ;;  %v838_v12 = vpop.f32.mrb[15].mxu1 }
 0x49e   :  { %v908_v13 = vadd.f32 %v873_v28, %v826_v11  ;;  %v912_v14 = vadd.f32 %v883_v29, %v838_v12  ;;  %v1397_v11 = vld [vmem:[#allocation2 + $0x20] sm:$0xff] }
 0x49f   :  { %v923_v15 = vmul.f32 %v907_v9, %v1694_v36  ;;  %v927_v16 = vmul.f32 %v911_v10, %v1710_v44  ;;  %v1396_v9 = vld [vmem:[#allocation2 + $0x18] sm:$0xff] }
 0x4a0   :  { %v924_v33 = vmul.f32 %v908_v13, %v1698_v38  ;;  %v928_v41 = vmul.f32 %v912_v14, %v1714_v46  ;;  %v842_v34 = vpop.f32.mrb[16].mxu1  ;;  %v898_v38 = vpop.permute.xlu1 %897  ;;  %v1398_v14 = vld [vmem:[#allocation2 + $0x28] sm:$0xff] }
 0x4a1   :  { %v1317_v18 = vpack.c.bf16 %v923_v15, %v921_v2  ;;  %v1321_v42 = vpack.c.bf16 %v927_v16, %v925_v4  ;;  %v913_v19 = vadd.f32 %v888_v17, %v842_v34  ;;  %v844_v20 = vpop.f32.mrb[17].mxu1  ;;  %v1394_v2 = vld [vmem:[#allocation2 + $0x8] sm:$0xff]  ;;  %v1399_v16 = vld [vmem:[#allocation2 + $0x30] sm:$0xff] }
 0x4a2   :  { %v914_v39 = vadd.f32 %v888_v17, %v844_v20  ;;  %v1315_v37 = vpack.c.bf16 %v924_v33, %v922_v5  ;;  %v1319_v47 = vpack.c.bf16 %v928_v41, %v926_v6  ;;  %v1395_v6 = vld [vmem:[#allocation2 + $0x10] sm:$0xff]  ;;  %v1400_v41 = vld [vmem:[#allocation2 + $0x38] sm:$0xff] }
 0x4a3   :  { %v929_v45 = vmul.f32 %v913_v19, %v1720_v49 }
 0x4a4   :  { %v930_v53 = vmul.f32 %v914_v39, %v1722_v50  ;;  %v848_v36 = vpop.f32.mrb[18].mxu1  ;;  %1316 = vmatprep.subr.bf16.mxu1 %v1315_v37  ;;  %v903_v26 = vpop.permute.xlu1 %902  ;;  %v1402_v39 = vld [vmem:[#allocation2 + $0x48] sm:$0xff] }
 0x4a5   :  { %v915_v44 = vadd.f32 %v893_v56, %v848_v36  ;;  %v850_v55 = vpop.f32.mrb[19].mxu1  ;;  %1318 = vmatpush1.bf16.msra.mxu1 %v1317_v18 }
 0x4a6   :  { %v916_v61 = vadd.f32 %v893_v56, %v850_v55  ;;  %1320 = vmatprep.subr.bf16.mxu1 %v1319_v47 }
 0x4a7   :  { %v931_v46 = vmul.f32 %v915_v44, %v1726_v52  ;;  %v1404_v44 = vld [vmem:[#allocation2 + $0x58] sm:$0xff] }
 0x4a8   :  { %v932_v63 = vmul.f32 %v916_v61, %v1730_v54  ;;  %v854_v21 = vpop.f32.mrb[20].mxu1  ;;  %v1405_v61 = vld [vmem:[#allocation2 + $0x60] sm:$0xff] }
 0x4a9   :  { %v1325_v22 = vpack.c.bf16 %v931_v46, %v929_v45  ;;  %v917_v23 = vadd.f32 %v898_v38, %v854_v21  ;;  %v856_v24 = vpop.f32.mrb[21].mxu1  ;;  %1322 = vmatpush1.bf16.msra.mxu1 %v1321_v42  ;;  %v1401_v42 = vld [vmem:[#allocation2 + $0x40] sm:$0xff]  ;;  %v1403_v45 = vld [vmem:[#allocation2 + $0x50] sm:$0xff]  ;;  %v1406_v21 = vld [vmem:[#allocation2 + $0x68] sm:$0xff] }
 0x4aa   :  { %v918_v49 = vadd.f32 %v898_v38, %v856_v24  ;;  %v1323_v25 = vpack.c.bf16 %v932_v63, %v930_v53  ;;  %v1407_v24 = vld [vmem:[#allocation2 + $0x70] sm:$0xff] }
 0x4ab   :  { %v933_v50 = vmul.f32 %v917_v23, %v1736_v57  ;;  %v107_v57 = vld [vmem:[#allocation5 + $0x8] sm:$0xff] }
 0x4ac   :  { %v934_v27 = vmul.f32 %v918_v49, %v1738_v58  ;;  %v860_v28 = vpop.f32.mrb[22].mxu1  ;;  %1324 = vmatprep.subr.bf16.mxu1 %v1323_v25  ;;  %v108_v58 = vld [vmem:[#allocation5 + $0x10] sm:$0xff] }
 0x4ad   :  { %v919_v29 = vadd.f32 %v903_v26, %v860_v28  ;;  %v862_v30 = vpop.f32.mrb[23].mxu1  ;;  %1326 = vmatpush1.bf16.msra.mxu1 %v1325_v22 }
 0x4ae   :  { %v920_v52 = vadd.f32 %v903_v26, %v862_v30 }
 0x4af   :  { %v935_v54 = vmul.f32 %v919_v29, %v1742_v60  ;;  %v109_v60 = vld [vmem:[#allocation5 + $0x18] sm:$0xff] }
 0x4b0   :  { %v936_v31 = vmul.f32 %v920_v52, %v1746_v62  ;;  %v110_v62 = vld [vmem:[#allocation5 + $0x20] sm:$0xff] }
 0x4b1   :  { %v1329_v32 = vpack.c.bf16 %v935_v54, %v933_v50  ;;  %v1408_v50 = vld [vmem:[#allocation2 + $0x78] sm:$0xff] }
 0x4b2   :  { %v1327_v35 = vpack.c.bf16 %v936_v31, %v934_v27 }
 0x4b4   :  { %1328 = vmatprep.subr.bf16.mxu1 %v1327_v35 }
 0x4b5   :  { %1330 = vmatpush1.bf16.msra.mxu1 %v1329_v32 }
 0x4b8   :  { %1147 = vmatmul.mubr.msk.f32.vlgmr.msra.gmra.mrb[24].mxu1 %vm196_vm0, %v106_v40 }
 0x4b9   :  { %1031 = vmatprep.mubr.f32.mxu1 %v1535_v0 }
 0x4bc   :  { %1148 = vmatmul.mubr.msk.f32.gmra.mrb[26].mxu1 %vm196_vm0, %v107_v57 }
 0x4bd   :  { %1037 = vmatprep.mubr.f32.mxu1 %v1535_v0 }
 0x4c0   :  { %1149 = vmatmul.mubr.msk.f32.gmra.mrb[28].mxu1 %vm196_vm0, %v108_v58 }
 0x4c1   :  { %1043 = vmatprep.mubr.f32.mxu1 %v1535_v0 }
 0x4c4   :  { %1150 = vmatmul.mubr.msk.f32.gmra.mrb[30].mxu1 %vm196_vm0, %v109_v60 }
 0x4c5   :  { %1049 = vmatprep.mubr.f32.mxu1 %v1535_v0 }
 0x4c8   :  { %1151 = vmatmul.mubr.msk.f32.gmra.mrb[32].mxu1 %vm196_vm0, %v110_v62 }
 0x4c9   :  { %1055 = vmatprep.mubr.f32.mxu1 %v1535_v0 }
 0x4cc   :  { %1152 = vmatmul.mubr.msk.f32.gmra.mrb[34].mxu1 %vm196_vm0, %v111_v43 }
 0x4cd   :  { %1061 = vmatprep.mubr.f32.mxu1 %v1535_v0 }
 0x4d0   :  { %1153 = vmatmul.mubr.msk.f32.gmra.mrb[36].mxu1 %vm196_vm0, %v112_v48 }
 0x4d1   :  { %1067 = vmatprep.mubr.f32.mxu1 %v1535_v0 }
 0x4d4   :  { %1154 = vmatmul.mubr.msk.f32.gmra.mrb[38].mxu1 %vm196_vm0, %v113_v51 }
 0x58b   :  { %v1027_v56 = vpop.f32.mrb[24].mxu1 }
 0x58c   :  { %v1028_v59 = vadd.f32 %v1027_v56, %v1646_v3  ;;  %v1029_v1 = vpop.f32.mrb[25].mxu1 }
 0x58d   :  { %v1030_v4 = vadd.f32 %v1394_v2, %v1029_v1 }
 0x58e   :  { %1074 = vst [vmem:[#allocation10] sm:$0xff] %v1028_v59 }
 0x58f   :  { %1075 = vst [vmem:[#allocation10 + $0x8] sm:$0xff] %v1030_v4  ;;  %v1033_v5 = vpop.f32.mrb[26].mxu1 }
 0x590   :  { %v1034_v7 = vadd.f32 %v1395_v6, %v1033_v5  ;;  %v1035_v8 = vpop.f32.mrb[27].mxu1 }
 0x591   :  { %v1036_v10 = vadd.f32 %v1396_v9, %v1035_v8 }
 0x592   :  { %1076 = vst [vmem:[#allocation10 + $0x10] sm:$0xff] %v1034_v7 }
 0x593   :  { %1077 = vst [vmem:[#allocation10 + $0x18] sm:$0xff] %v1036_v10  ;;  %v1039_v0 = vpop.f32.mrb[28].mxu1 }
 0x594   :  { %v1040_v12 = vadd.f32 %v1397_v11, %v1039_v0  ;;  %v1041_v13 = vpop.f32.mrb[29].mxu1 }
 0x595   :  { %v1042_v15 = vadd.f32 %v1398_v14, %v1041_v13 }
 0x596   :  { %1078 = vst [vmem:[#allocation10 + $0x20] sm:$0xff] %v1040_v12 }
 0x597   :  { %1079 = vst [vmem:[#allocation10 + $0x28] sm:$0xff] %v1042_v15  ;;  %v1045_v3 = vpop.f32.mrb[30].mxu1 }
 0x598   :  { %v1046_v17 = vadd.f32 %v1399_v16, %v1045_v3  ;;  %v1047_v33 = vpop.f32.mrb[31].mxu1 }
 0x599   :  { %v1048_v34 = vadd.f32 %v1400_v41, %v1047_v33 }
 0x59a   :  { %1080 = vst [vmem:[#allocation10 + $0x30] sm:$0xff] %v1046_v17 }
 0x59b   :  { %1081 = vst [vmem:[#allocation10 + $0x38] sm:$0xff] %v1048_v34  ;;  %v1051_v18 = vpop.f32.mrb[32].mxu1 }
 0x59c   :  { %v1052_v19 = vadd.f32 %v1401_v42, %v1051_v18  ;;  %v1053_v20 = vpop.f32.mrb[33].mxu1 }
 0x59d   :  { %v1054_v37 = vadd.f32 %v1402_v39, %v1053_v20 }
 0x59e   :  { %1082 = vst [vmem:[#allocation10 + $0x40] sm:$0xff] %v1052_v19 }
 0x59f   :  { %1083 = vst [vmem:[#allocation10 + $0x48] sm:$0xff] %v1054_v37  ;;  %v1057_v47 = vpop.f32.mrb[34].mxu1 }
 0x5a0   :  { %v1058_v53 = vadd.f32 %v1403_v45, %v1057_v47  ;;  %v1059_v36 = vpop.f32.mrb[35].mxu1 }
 0x5a1   :  { %v1060_v55 = vadd.f32 %v1404_v44, %v1059_v36 }
 0x5a2   :  { %1084 = vst [vmem:[#allocation10 + $0x50] sm:$0xff] %v1058_v53 }
 0x5a3   :  { %1085 = vst [vmem:[#allocation10 + $0x58] sm:$0xff] %v1060_v55  ;;  %v1063_v38 = vpop.f32.mrb[36].mxu1 }
 0x5a4   :  { %v1064_v46 = vadd.f32 %v1405_v61, %v1063_v38  ;;  %v1065_v63 = vpop.f32.mrb[37].mxu1 }
 0x5a5   :  { %v1066_v22 = vadd.f32 %v1406_v21, %v1065_v63 }
 0x5a6   :  { %1086 = vst [vmem:[#allocation10 + $0x60] sm:$0xff] %v1064_v46 }
 0x5a7   :  { %1087 = vst [vmem:[#allocation10 + $0x68] sm:$0xff] %v1066_v22  ;;  %v1069_v23 = vpop.f32.mrb[38].mxu1 }
 0x5a8   :  { %v1070_v49 = vadd.f32 %v1407_v24, %v1069_v23  ;;  %v1071_v25 = vpop.f32.mrb[39].mxu1 }
 0x5a9   :  { %v1072_v26 = vadd.f32 %v1408_v50, %v1071_v25 }
 0x5aa   :  { %1088 = vst [vmem:[#allocation10 + $0x70] sm:$0xff] %v1070_v49 }
 0x5ab   :  { %1089 = vst [vmem:[#allocation10 + $0x78] sm:$0xff] %v1072_v26 }
 0x5ac   :  { %1508 = shalt.err (!%p1505_p8)
}
 0x5ad   :  { %s1509_s16 = scalar_lea.hbm %s1889_s7, 2048 }
 0x5ae   :  { %p1510_p9 = scmp.ne.s32.totalorder %s1889_s7, %s1509_s16  ;;  %p1513_p10 = scmp.lt.u32.totalorder %s1509_s16, %s1889_s7 }
 0x5b0   :  { %p1515_p11 = pnand %p1513_p10, %p1510_p9 }
 0x5b2   :  { %1518 = shalt.err (!%p1515_p11)
}
 0x5b3   :  { %1101 = dma.vmem_to_hbm [thread:$0]  %s1096_s15, 2048, %s1889_s7, [#allocation4], %s1531_s2, %s1531_s2, %s1532_s25  }
 0x5b4   :  { %1525 = dma.done.wait [#allocation4], 2048  }
 0x5b5   :  { %1526 = vsyncadd [#allocation4], 4294965248 }
 0x5b6   :  { %1105 = vsyncpa [#allocation3], 1 }
 0x5b7   :  { %1106 = vsyncpa [#allocation6], 1 }
 0x5b8   :  { %1107 = vsyncpa [#allocation9], 1 }
 0x5b9   :  { %1108 = vsyncpa [#allocation4], 1 }

</bundles_post_ra>
